<compile_context>
chip_gen: v7x
topology: tpu7x:2x2x1
jax: 0.10.0
libtpu: 0.0.40
codegen_flags: <defaults>
</compile_context>

<pallas_src>
import jax
import jax.numpy as jnp
from jax.experimental import pallas as pl
from jax.experimental.pallas import tpu as pltpu


def _pick_spatial_tile(S):
    """Largest lane tile (<=2048) that evenly covers the flattened spatial axis."""
    if S <= 2048:
        return S                      # full-dim block (no 128-alignment requirement)
    for cand in (2048, 1024, 512, 256, 128):
        if S % cand == 0:
            return cand
    # TODO(synk): ragged spatial tails need a masked tail tile (and the mask must
    # also exclude pad voxels from the BN statistics).
    raise ValueError("D*H*W must be <= 2048 or a multiple of 128")


# ---------------------------------------------------------------------------
# Pass 1: per-sample partial BN statistics straight from X.
#   For each batch sample n:  sum_s x[:, s]  and  Gram = X X^T  (C_in x C_in).
#   Tiles along the voxel (lane) axis accumulate into resident VMEM scratch.
# ---------------------------------------------------------------------------
def stats_kernel(x_ref, psum_ref, pgram_ref, acc_sum, acc_gram):
    t = pl.program_id(1)

    @pl.when(t == 0)
    def _init():
        acc_sum[...] = jnp.zeros_like(acc_sum)
        acc_gram[...] = jnp.zeros_like(acc_gram)

    x = x_ref[...]                                          # (C_in, TS), lane-dense
    acc_sum[...] += jnp.sum(x, axis=1, keepdims=True)       # (C_in, 1)
    # X @ X^T, contracting over the big lane axis (proper MXU use: K = TS).
    acc_gram[...] += jax.lax.dot_general(
        x, x, dimension_numbers=(((1,), (1,)), ((), ())),
        preferred_element_type=jnp.float32)                 # (C_in, C_in)

    @pl.when(t == pl.num_programs(1) - 1)
    def _flush():
        psum_ref[...] = acc_sum[...]
        pgram_ref[...] = acc_gram[...]


# ---------------------------------------------------------------------------
# Pass 2: fused conv(1x1x1) + folded-BN affine + ReLU.
#   BN scale is pre-folded into w_fused; bias+BN shift pre-folded into shift_fused.
#   The K = C_in contraction is an unrolled VPU broadcast-FMA chain (MXU not needed).
# ---------------------------------------------------------------------------
def conv_bn_relu_kernel(x_ref, w_ref, shift_ref, o_ref):
    C_in, TS = x_ref.shape
    C_out = w_ref.shape[0]
    x = x_ref[...]                                          # (C_in, TS)
    w = w_ref[...]                                          # (C_out, C_in)
    y = jnp.zeros((C_out, TS), dtype=jnp.float32)
    for k in range(C_in):                                   # tiny, statically unrolled
        y = y + w[:, k:k + 1] * x[k:k + 1, :]               # (C_out,1)*(1,TS) bcast FMA
    o_ref[...] = jnp.maximum(y + shift_ref[...], 0.0)       # + (C_out,1), ReLU


def conv_1x1x1_forward(x_ncdhw, weight, bias, gamma, beta, eps=1e-5):
    """x_ncdhw: (N, C_in, D, H, W) f32.  weight: (C_out, C_in).  Returns NCDHW f32."""
    N, C_in, D, H, W = x_ncdhw.shape
    C_out = weight.shape[0]
    S = D * H * W
    TS = _pick_spatial_tile(S)
    n_tiles = S // TS

    # Free reshape (NCDHW is already channels-major): no HBM transpose.
    x = x_ncdhw.reshape(N, C_in, S).astype(jnp.float32)

    # --- pass 1: partial statistics per batch sample ---
    psum, pgram = pl.pallas_call(
        stats_kernel,
        out_shape=(
            jax.ShapeDtypeStruct((N, C_in, 1), jnp.float32),
            jax.ShapeDtypeStruct((N, C_in, C_in), jnp.float32),
        ),
        grid_spec=pltpu.PrefetchScalarGridSpec(
            num_scalar_prefetch=0,
            grid=(N, n_tiles),
            in_specs=[pl.BlockSpec((None, C_in, TS), lambda n, t: (n, 0, t))],
            out_specs=(
                pl.BlockSpec((None, C_in, 1), lambda n, t: (n, 0, 0)),
                pl.BlockSpec((None, C_in, C_in), lambda n, t: (n, 0, 0)),
            ),
            scratch_shapes=[
                pltpu.VMEM((C_in, 1), jnp.float32),
                pltpu.VMEM((C_in, C_in), jnp.float32),
            ],
        ),
        compiler_params=pltpu.CompilerParams(
            dimension_semantics=("parallel", "arbitrary")),
    )(x)

    # --- tiny glue: finalize BN statistics and fold BN into conv weight/bias ---
    weight = weight.astype(jnp.float32)
    total = jnp.float32(N * S)
    sum_x = jnp.sum(psum[:, :, 0], axis=0)                  # (C_in,)
    gram = jnp.sum(pgram, axis=0)                           # (C_in, C_in)
    mean_x = sum_x / total
    cov_x = gram / total - jnp.outer(mean_x, mean_x)
    mean_y = weight @ mean_x + bias                         # (C_out,)
    var_y = jnp.einsum("ok,kl,ol->o", weight, cov_x, weight)
    var_y = jnp.maximum(var_y, 0.0)                         # biased batch variance
    inv_std = jax.lax.rsqrt(var_y + eps)
    scale = gamma * inv_std                                 # (C_out,)
    w_fused = scale[:, None] * weight                       # (C_out, C_in)
    shift_fused = (beta + scale * (bias - mean_y)).reshape(C_out, 1)
    # TODO(synk): running_mean / running_var momentum updates are stateful module
    # buffers and are not part of the functional forward output; not implemented.

    # --- pass 2: fused conv + BN + ReLU, lane-dense unmasked stores ---
    out = pl.pallas_call(
        conv_bn_relu_kernel,
        out_shape=jax.ShapeDtypeStruct((N, C_out, S), jnp.float32),
        grid_spec=pltpu.PrefetchScalarGridSpec(
            num_scalar_prefetch=0,
            grid=(N, n_tiles),
            in_specs=[
                pl.BlockSpec((None, C_in, TS), lambda n, t: (n, 0, t)),
                pl.BlockSpec((C_out, C_in), lambda n, t: (0, 0)),
                pl.BlockSpec((C_out, 1), lambda n, t: (0, 0)),
            ],
            out_specs=pl.BlockSpec((None, C_out, TS), lambda n, t: (n, 0, t)),
        ),
        compiler_params=pltpu.CompilerParams(
            dimension_semantics=("parallel", "parallel")),
    )(x, w_fused, shift_fused)

    return out.reshape(N, C_out, D, H, W)


def reference_forward(x, weight, bias, gamma, beta, eps=1e-5):
    """Pure-JAX reference of Conv_1x1x1 forward (training-mode BN, ReLU)."""
    y = jnp.einsum("ncdhw,oc->nodhw", x, weight) + bias[None, :, None, None, None]
    mean = jnp.mean(y, axis=(0, 2, 3, 4))
    var = jnp.mean((y - mean[None, :, None, None, None]) ** 2, axis=(0, 2, 3, 4))
    y_n = (y - mean[None, :, None, None, None]) * jax.lax.rsqrt(var + eps)[None, :, None, None, None]
    y_n = y_n * gamma[None, :, None, None, None] + beta[None, :, None, None, None]
    return jnp.maximum(y_n, 0.0)


if __name__ == "__main__":
    key = jax.random.PRNGKey(0)
    k_x, k_w, k_b, k_g, k_beta = jax.random.split(key, 5)

    N, C_in, C_out, D, H, W = 2, 4, 8, 16, 16, 16

    x = jax.random.normal(k_x, (N, C_in, D, H, W), dtype=jnp.float32)
    # nn.Conv3d(in_dim, out_dim, kernel_size=1) -> weight (C_out, C_in, 1,1,1), bias (C_out,)
    weight = jax.random.normal(k_w, (C_out, C_in), dtype=jnp.float32) * 0.1
    bias = jax.random.normal(k_b, (C_out,), dtype=jnp.float32) * 0.1
    # BN affine parameters (PyTorch inits gamma=1, beta=0; perturb deterministically)
    gamma = 1.0 + 0.1 * jax.random.normal(k_g, (C_out,), dtype=jnp.float32)
    beta = 0.1 * jax.random.normal(k_beta, (C_out,), dtype=jnp.float32)

    fwd = jax.jit(conv_1x1x1_forward)
    out = jax.block_until_ready(fwd(x, weight, bias, gamma, beta))

    ref = reference_forward(x, weight, bias, gamma, beta)
    assert out.shape == (N, C_out, D, H, W)
    assert jnp.allclose(out, ref, atol=1e-3, rtol=1e-3), "mismatch vs reference"

    print("KERNEL_OK")
</pallas_src>

<mosaic_0001>
module attributes {stable_mosaic.version = 11 : i64} {
  func.func @stats_kernel(%arg0: i32, %arg1: i32, %arg2: memref<1x4x2048xf32, #tpu.memory_space<vmem>>, %arg3: memref<1x4x1xf32, #tpu.memory_space<vmem>>, %arg4: memref<1x4x4xf32, #tpu.memory_space<vmem>>, %arg5: memref<4x1xf32, #tpu.memory_space<vmem>>, %arg6: memref<4x4xf32, #tpu.memory_space<vmem>>) attributes {dimension_semantics = [#tpu.dimension_semantics<parallel>, #tpu.dimension_semantics<arbitrary>], iteration_bounds = array<i64: 2, 2>, scalar_prefetch = 0 : i64, scratch_operands = 2 : i64, tpu.core_type = #tpu.core_type<tc>, window_params = [{transform_indices = @transform_0, window_bounds = array<i64: 1, 4, 2048>}, {transform_indices = @transform_1, window_bounds = array<i64: 1, 4, 1>}, {transform_indices = @transform_2, window_bounds = array<i64: 1, 4, 4>}]} {
    %c0_i32 = arith.constant 0 : i32
    %0 = arith.cmpi eq, %arg1, %c0_i32 : i32
    %1 = arith.extui %0 : i1 to i32
    %c0_i32_0 = arith.constant 0 : i32
    %2 = arith.cmpi ne, %1, %c0_i32_0 : i32
    scf.if %2 {
      %cst_13 = arith.constant 0.000000e+00 : f32
      %17 = vector.broadcast %cst_13 : f32 to vector<4x1xf32>
      %c0_14 = arith.constant 0 : index
      %c0_15 = arith.constant 0 : index
      %18 = vector.load %arg5[%c0_14, %c0_15] : memref<4x1xf32, #tpu.memory_space<vmem>>, vector<4x1xf32>
      tpu.vector_store %arg5[%c0_14, %c0_15], %17 {strides = array<i32>} : memref<4x1xf32, #tpu.memory_space<vmem>>, vector<4x1xf32>,
      %cst_16 = arith.constant 0.000000e+00 : f32
      %19 = vector.broadcast %cst_16 : f32 to vector<4x4xf32>
      %c0_17 = arith.constant 0 : index
      %c0_18 = arith.constant 0 : index
      %20 = vector.load %arg6[%c0_17, %c0_18] : memref<4x4xf32, #tpu.memory_space<vmem>>, vector<4x4xf32>
      tpu.vector_store %arg6[%c0_17, %c0_18], %19 {strides = array<i32>} : memref<4x4xf32, #tpu.memory_space<vmem>>, vector<4x4xf32>,
    } else {
    }
    %c0 = arith.constant 0 : index
    %c0_1 = arith.constant 0 : index
    %c0_2 = arith.constant 0 : index
    %3 = vector.load %arg2[%c0, %c0_1, %c0_2] : memref<1x4x2048xf32, #tpu.memory_space<vmem>>, vector<1x4x2048xf32>
    %4 = vector.shape_cast %3 : vector<1x4x2048xf32> to vector<4x2048xf32>
    %c0_3 = arith.constant 0 : index
    %c0_4 = arith.constant 0 : index
    %5 = vector.load %arg5[%c0_3, %c0_4] : memref<4x1xf32, #tpu.memory_space<vmem>>, vector<4x1xf32>
    %cst = arith.constant dense<0.000000e+00> : vector<4xf32>
    %6 = vector.multi_reduction <add>, %4, %cst [1] : vector<4x2048xf32> to vector<4xf32>
    %7 = vector.shape_cast %6 : vector<4xf32> to vector<4x1xf32>
    %8 = arith.addf %5, %7 : vector<4x1xf32>
    %c0_5 = arith.constant 0 : index
    %c0_6 = arith.constant 0 : index
    %9 = vector.load %arg5[%c0_5, %c0_6] : memref<4x1xf32, #tpu.memory_space<vmem>>, vector<4x1xf32>
    tpu.vector_store %arg5[%c0_5, %c0_6], %8 {strides = array<i32>} : memref<4x1xf32, #tpu.memory_space<vmem>>, vector<4x1xf32>,
    %c0_7 = arith.constant 0 : index
    %c0_8 = arith.constant 0 : index
    %10 = vector.load %arg6[%c0_7, %c0_8] : memref<4x4xf32, #tpu.memory_space<vmem>>, vector<4x4xf32>
    %cst_9 = arith.constant dense<0.000000e+00> : vector<4x4xf32>
    %11 = tpu.matmul %4, %4, %cst_9 {dimension_numbers = #tpu.dot_dimension_numbers<[1], [1], [0], [0], [0, 0, 1, 0], [], []>} : vector<4x2048xf32>, vector<4x2048xf32>, vector<4x4xf32> -> vector<4x4xf32>
    %12 = arith.addf %10, %11 : vector<4x4xf32>
    %c0_10 = arith.constant 0 : index
    %c0_11 = arith.constant 0 : index
    %13 = vector.load %arg6[%c0_10, %c0_11] : memref<4x4xf32, #tpu.memory_space<vmem>>, vector<4x4xf32>
    tpu.vector_store %arg6[%c0_10, %c0_11], %12 {strides = array<i32>} : memref<4x4xf32, #tpu.memory_space<vmem>>, vector<4x4xf32>,
    %c1_i32 = arith.constant 1 : i32
    %14 = arith.cmpi eq, %arg1, %c1_i32 : i32
    %15 = arith.extui %14 : i1 to i32
    %c0_i32_12 = arith.constant 0 : i32
    %16 = arith.cmpi ne, %15, %c0_i32_12 : i32
    scf.if %16 {
      %c0_13 = arith.constant 0 : index
      %c0_14 = arith.constant 0 : index
      %17 = vector.load %arg5[%c0_13, %c0_14] : memref<4x1xf32, #tpu.memory_space<vmem>>, vector<4x1xf32>
      %c0_15 = arith.constant 0 : index
      %c0_16 = arith.constant 0 : index
      %c0_17 = arith.constant 0 : index
      %18 = vector.load %arg3[%c0_15, %c0_16, %c0_17] : memref<1x4x1xf32, #tpu.memory_space<vmem>>, vector<1x4x1xf32>
      %19 = vector.shape_cast %18 : vector<1x4x1xf32> to vector<4x1xf32>
      %20 = vector.shape_cast %17 : vector<4x1xf32> to vector<1x4x1xf32>
      tpu.vector_store %arg3[%c0_15, %c0_16, %c0_17], %20 {strides = array<i32>} : memref<1x4x1xf32, #tpu.memory_space<vmem>>, vector<1x4x1xf32>,
      %c0_18 = arith.constant 0 : index
      %c0_19 = arith.constant 0 : index
      %21 = vector.load %arg6[%c0_18, %c0_19] : memref<4x4xf32, #tpu.memory_space<vmem>>, vector<4x4xf32>
      %c0_20 = arith.constant 0 : index
      %c0_21 = arith.constant 0 : index
      %c0_22 = arith.constant 0 : index
      %22 = vector.load %arg4[%c0_20, %c0_21, %c0_22] : memref<1x4x4xf32, #tpu.memory_space<vmem>>, vector<1x4x4xf32>
      %23 = vector.shape_cast %22 : vector<1x4x4xf32> to vector<4x4xf32>
      %24 = vector.shape_cast %21 : vector<4x4xf32> to vector<1x4x4xf32>
      tpu.vector_store %arg4[%c0_20, %c0_21, %c0_22], %24 {strides = array<i32>} : memref<1x4x4xf32, #tpu.memory_space<vmem>>, vector<1x4x4xf32>,
    } else {
    }
    return
  }
  func.func @transform_0(%arg0: i32, %arg1: i32) -> (i32, i32, i32) {
    %c0_i32 = arith.constant 0 : i32
    %c0_i32_0 = arith.constant 0 : i32
    return %arg0, %c0_i32, %arg1 : i32, i32, i32
  }
  func.func @transform_1(%arg0: i32, %arg1: i32) -> (i32, i32, i32) {
    %c0_i32 = arith.constant 0 : i32
    %c0_i32_0 = arith.constant 0 : i32
    %c0_i32_1 = arith.constant 0 : i32
    return %arg0, %c0_i32, %c0_i32_0 : i32, i32, i32
  }
  func.func @transform_2(%arg0: i32, %arg1: i32) -> (i32, i32, i32) {
    %c0_i32 = arith.constant 0 : i32
    %c0_i32_0 = arith.constant 0 : i32
    %c0_i32_1 = arith.constant 0 : i32
    return %arg0, %c0_i32, %c0_i32_0 : i32, i32, i32
  }
}

module attributes {stable_mosaic.version = 11 : i64} {
  func.func @conv_bn_relu_kernel(%arg0: i32, %arg1: i32, %arg2: memref<1x4x2048xf32, #tpu.memory_space<vmem>>, %arg3: memref<8x4xf32, #tpu.memory_space<vmem>>, %arg4: memref<8x1xf32, #tpu.memory_space<vmem>>, %arg5: memref<1x8x2048xf32, #tpu.memory_space<vmem>>) attributes {dimension_semantics = [#tpu.dimension_semantics<parallel>, #tpu.dimension_semantics<parallel>], iteration_bounds = array<i64: 2, 2>, scalar_prefetch = 0 : i64, scratch_operands = 0 : i64, tpu.core_type = #tpu.core_type<tc>, window_params = [{transform_indices = @transform_0, window_bounds = array<i64: 1, 4, 2048>}, {pipeline_mode = #tpu.pipeline_mode<synchronous>, transform_indices = @transform_1, window_bounds = array<i64: 8, 4>}, {pipeline_mode = #tpu.pipeline_mode<synchronous>, transform_indices = @transform_2, window_bounds = array<i64: 8, 1>}, {transform_indices = @transform_3, window_bounds = array<i64: 1, 8, 2048>}]} {
    %c0 = arith.constant 0 : index
    %c0_0 = arith.constant 0 : index
    %c0_1 = arith.constant 0 : index
    %0 = vector.load %arg2[%c0, %c0_0, %c0_1] : memref<1x4x2048xf32, #tpu.memory_space<vmem>>, vector<1x4x2048xf32>
    %1 = vector.shape_cast %0 : vector<1x4x2048xf32> to vector<4x2048xf32>
    %c0_2 = arith.constant 0 : index
    %c0_3 = arith.constant 0 : index
    %2 = vector.load %arg3[%c0_2, %c0_3] : memref<8x4xf32, #tpu.memory_space<vmem>>, vector<8x4xf32>
    %cst = arith.constant 0.000000e+00 : f32
    %3 = vector.broadcast %cst : f32 to vector<8x2048xf32>
    %4 = vector.extract_strided_slice %2 {offsets = [0, 0], sizes = [8, 1], strides = [1, 1]} : vector<8x4xf32> to vector<8x1xf32>
    %5 = vector.extract_strided_slice %1 {offsets = [0, 0], sizes = [1, 2048], strides = [1, 1]} : vector<4x2048xf32> to vector<1x2048xf32>
    %6 = vector.broadcast %4 : vector<8x1xf32> to vector<8x2048xf32>
    %7 = vector.broadcast %5 : vector<1x2048xf32> to vector<8x2048xf32>
    %8 = arith.mulf %6, %7 : vector<8x2048xf32>
    %9 = arith.addf %3, %8 : vector<8x2048xf32>
    %10 = vector.extract_strided_slice %2 {offsets = [0, 1], sizes = [8, 1], strides = [1, 1]} : vector<8x4xf32> to vector<8x1xf32>
    %11 = vector.extract_strided_slice %1 {offsets = [1, 0], sizes = [1, 2048], strides = [1, 1]} : vector<4x2048xf32> to vector<1x2048xf32>
    %12 = vector.broadcast %10 : vector<8x1xf32> to vector<8x2048xf32>
    %13 = vector.broadcast %11 : vector<1x2048xf32> to vector<8x2048xf32>
    %14 = arith.mulf %12, %13 : vector<8x2048xf32>
    %15 = arith.addf %9, %14 : vector<8x2048xf32>
    %16 = vector.extract_strided_slice %2 {offsets = [0, 2], sizes = [8, 1], strides = [1, 1]} : vector<8x4xf32> to vector<8x1xf32>
    %17 = vector.extract_strided_slice %1 {offsets = [2, 0], sizes = [1, 2048], strides = [1, 1]} : vector<4x2048xf32> to vector<1x2048xf32>
    %18 = vector.broadcast %16 : vector<8x1xf32> to vector<8x2048xf32>
    %19 = vector.broadcast %17 : vector<1x2048xf32> to vector<8x2048xf32>
    %20 = arith.mulf %18, %19 : vector<8x2048xf32>
    %21 = arith.addf %15, %20 : vector<8x2048xf32>
    %22 = vector.extract_strided_slice %2 {offsets = [0, 3], sizes = [8, 1], strides = [1, 1]} : vector<8x4xf32> to vector<8x1xf32>
    %23 = vector.extract_strided_slice %1 {offsets = [3, 0], sizes = [1, 2048], strides = [1, 1]} : vector<4x2048xf32> to vector<1x2048xf32>
    %24 = vector.broadcast %22 : vector<8x1xf32> to vector<8x2048xf32>
    %25 = vector.broadcast %23 : vector<1x2048xf32> to vector<8x2048xf32>
    %26 = arith.mulf %24, %25 : vector<8x2048xf32>
    %27 = arith.addf %21, %26 : vector<8x2048xf32>
    %c0_4 = arith.constant 0 : index
    %c0_5 = arith.constant 0 : index
    %28 = vector.load %arg4[%c0_4, %c0_5] : memref<8x1xf32, #tpu.memory_space<vmem>>, vector<8x1xf32>
    %29 = vector.broadcast %28 : vector<8x1xf32> to vector<8x2048xf32>
    %30 = arith.addf %27, %29 : vector<8x2048xf32>
    %cst_6 = arith.constant 0.000000e+00 : f32
    %31 = vector.broadcast %cst_6 : f32 to vector<8x2048xf32>
    %32 = arith.maximumf %30, %31 : vector<8x2048xf32>
    %c0_7 = arith.constant 0 : index
    %c0_8 = arith.constant 0 : index
    %c0_9 = arith.constant 0 : index
    %33 = vector.load %arg5[%c0_7, %c0_8, %c0_9] : memref<1x8x2048xf32, #tpu.memory_space<vmem>>, vector<1x8x2048xf32>
    %34 = vector.shape_cast %33 : vector<1x8x2048xf32> to vector<8x2048xf32>
    %35 = vector.shape_cast %32 : vector<8x2048xf32> to vector<1x8x2048xf32>
    tpu.vector_store %arg5[%c0_7, %c0_8, %c0_9], %35 {strides = array<i32>} : memref<1x8x2048xf32, #tpu.memory_space<vmem>>, vector<1x8x2048xf32>,
    return
  }
  func.func @transform_0(%arg0: i32, %arg1: i32) -> (i32, i32, i32) {
    %c0_i32 = arith.constant 0 : i32
    %c0_i32_0 = arith.constant 0 : i32
    return %arg0, %c0_i32, %arg1 : i32, i32, i32
  }
  func.func @transform_1(%arg0: i32, %arg1: i32) -> (i32, i32) {
    %c0_i32 = arith.constant 0 : i32
    %c0_i32_0 = arith.constant 0 : i32
    %c0_i32_1 = arith.constant 0 : i32
    return %c0_i32, %c0_i32_0 : i32, i32
  }
  func.func @transform_2(%arg0: i32, %arg1: i32) -> (i32, i32) {
    %c0_i32 = arith.constant 0 : i32
    %c0_i32_0 = arith.constant 0 : i32
    %c0_i32_1 = arith.constant 0 : i32
    return %c0_i32, %c0_i32_0 : i32, i32
  }
  func.func @transform_3(%arg0: i32, %arg1: i32) -> (i32, i32, i32) {
    %c0_i32 = arith.constant 0 : i32
    %c0_i32_0 = arith.constant 0 : i32
    return %arg0, %c0_i32, %arg1 : i32, i32, i32
  }
}

</mosaic_0001>

<bundles_post_ra>
// kernel: conv_1x1x1_forward.2
= control target key start
LH: loop header
LB: loop body
LE: loop exit
PB: predicated region body
PF: predicated region fallthrough
CT: control target
= control target key end

     0   :  { %s1051_s9 = smov 0   ;;  %s1053_s10 = smov 0   ;;  %s1144_s0 = inlined_call_operand.vmem [shape: f32[2,4,4096], index: 0, kind: input, shape index: {}]   ;;  %s1145_s1 = inlined_call_operand.vmem [shape: f32[2,4,1], index: 1, kind: output, shape index: {0}]   ;;  %s1146_s2 = inlined_call_operand.vmem [shape: f32[2,4,4], index: 2, kind: output, shape index: {1}]  }
   0x1   :  { %s1055_s11 = smov 0   ;;  %s1057_s12 = smov 0  }
   0x2   :  { %s1059_s13 = smov 0  }
   0x3 LB: > { %s22_s14 = sadd.s32 1, %s1025_s11  ;;  %s25_s15 = sadd.s32 1, %s1029_s12  ;;  %s1033_s13 = sphi %s1059_s13, %s13_s13   ;;  %s1029_s12 = sphi %s1057_s12, %s1150_s12   ;;  %s1025_s11 = sphi %s1055_s11, %s1149_s11   ;;  %s1021_s10 = sphi %s1053_s10, %s1148_s10   ;;  %s1017_s9 = sphi %s1051_s9, %s1147_s9  }
   0x4   : > { %p23_p0 = scmp.ge.s32.totalorder %s22_s14, 2  ;;  %p936_p1 = scmp.ge.s32.totalorder %s1033_s13, 1 }
   0x5   : > { %p134_p2 = scmp.lt.s32.totalorder %s1033_s13, 5 }
   0x6   : > { %s1152_s14 = smov (%p23_p0, %s22_s14), 0  ;;  %s1154_s15 = smov (!%p23_p0, %s25_s15), %s1029_s12 }
   0x7   : > { %p135_p3 = pnand %p936_p1, %p134_p2  ;;  %p27_p4 = scmp.ge.s32.totalorder %s1154_s15, 2 }
   0x8   : > { %s937_s16 = sshll.u32 (!%p135_p3), %s1017_s9, 4  ;;  %p164_p5 = scmp.lt.s32.totalorder (!%p135_p3), %s1021_s10, 1 }
   0x9   : > { %s1156_s15 = smov (%p27_p4, %s1154_s15), 0  ;;  %138 = sbr.rel (%p135_p3) target bundleno = 273 (0x111), region = 24 }
   0xa   : > { %p166_p6 = scmp.lt.s32.totalorder (!%p135_p3), %s937_s16, 31  ;;  %p942_p7 = scmp.ne.s32.totalorder (!%p135_p3), %s1017_s9, 0 }
  0x10   : > { %s1158_s10 = smov (!%p164_p5, %s1021_s10), 1  ;;  %s1160_s16 = smov (!%p166_p6, %s937_s16), 31 }
  0x11   : > { %s938_s17 = sshll.u32 %s1158_s10, 5  ;;  %s940_s18 = sshll.u32 %s1158_s10, 2  ;;  %vm185_vm0 = vcmask (!%p942_p7), 3072   ;;  %vm187_vm1 = vcmask (!%p942_p7), 27648   ;;  %v1035_v0 = vmov (!%p942_p7), 0.0  }
  0x12   : > { %s169_s19 = sadd.s32 %s938_s17, %s1160_s16  ;;  %s1087_s22 = scalar_lea.vmem %s1145_s1, %s940_s18  ;;  %186 = vst.msk [vmem:[#allocation2] sm:$0xf] (!%p942_p7), %vm185_vm0, %v1035_v0 }
  0x13   : > { %s939_s23 = sshll.u32 %s169_s19, 2  ;;  %s1092_s26 = scalar_lea.vmem %s1146_s2, %s940_s18  ;;  %188 = vst.msk [vmem:[#allocation3] sm:$0xf] (!%p942_p7), %vm187_vm1, %v1035_v0 }
  0x14   : > { %s1097_s29 = scalar_lea.vmem %s1144_s0, %s939_s23  ;;  %184 = sbr.rel (%p942_p7) target bundleno = 27 (0x1b), region = 28 }
  0x1b PF: > { %v189_v1 = vld [vmem:[%s1097_s29] sm:$0xff]  ;;  %vm222_vm2 = vcmask 1043456   ;;  %v190_v2 = vld [vmem:[%s1097_s29 + $0x8] sm:$0xff]  ;;  %v191_v3 = vld [vmem:[%s1097_s29 + $0x10] sm:$0xff]  ;;  %vm257_vm3 = vcmask 3072   ;;  %vm821_vm4 = vcmask 27648  }
  0x1c   : > { %v206_v4 = vcombine.high %v189_v1, %v189_v1  ;;  %v223_v5 = vsel %vm222_vm2, %v189_v1, 0.0  ;;  %v207_v6 = vcombine.high %v190_v2, %v190_v2  ;;  %v192_v7 = vld [vmem:[%s1097_s29 + $0x18] sm:$0xff]  ;;  %v208_v8 = vcombine.high %v191_v3, %v191_v3  ;;  %v193_v10 = vld [vmem:[%s1097_s29 + $0x20] sm:$0xff]  ;;  %v194_v13 = vld [vmem:[%s1097_s29 + $0x28] sm:$0xff]  ;;  %p943_p8 = scmp.ne.s32.totalorder %s1017_s9, 1 }
  0x1d   : > { %v209_v9 = vcombine.high %v192_v7, %v192_v7  ;;  %v226_v12 = vsel %vm222_vm2, %v190_v2, 0.0  ;;  %v210_v16 = vcombine.high %v193_v10, %v193_v10  ;;  %v211_v18 = vcombine.high %v194_v13, %v194_v13  ;;  %v195_v20 = vld [vmem:[%s1097_s29 + $0x30] sm:$0xff]  ;;  %v196_v22 = vld [vmem:[%s1097_s29 + $0x38] sm:$0xff]  ;;  %v197_v48 = vld [vmem:[#allocation2] sm:$0xf] }
  0x1e   : > { %v224_v11 = vsel %vm222_vm2, %v206_v4, 0.0  ;;  %260 = vmatprep.subr.mxu0 %v206_v4  ;;  %330 = vmatprep.subr.mxu1 %v207_v6  ;;  %v228_v15 = vsel %vm222_vm2, %v207_v6, 0.0  ;;  %v230_v19 = vsel %vm222_vm2, %v191_v3, 0.0  ;;  %v232_v23 = vsel %vm222_vm2, %v208_v8, 0.0 }
  0x1f   : > { %v225_v14 = vadd.f32 %v224_v11, %v223_v5  ;;  %261 = vmatpush1.xpose.msra.mxu0 %v189_v1  ;;  %331 = vmatpush1.xpose.msra.mxu1 %v190_v2  ;;  %v212_v25 = vcombine.high %v195_v20, %v195_v20  ;;  %v234_v26 = vsel %vm222_vm2, %v192_v7, 0.0  ;;  %v213_v27 = vcombine.high %v196_v22, %v196_v22 }
  0x20   : > { %324 = vmatprep.mubr.f32.mxu0 %v206_v4  ;;  %394 = vmatprep.mubr.f32.mxu1 %v207_v6  ;;  %v236_v29 = vsel %vm222_vm2, %v209_v9, 0.0  ;;  %v238_v31 = vsel %vm222_vm2, %v193_v10, 0.0  ;;  %v240_v33 = vsel %vm222_vm2, %v210_v16, 0.0  ;;  %v242_v35 = vsel %vm222_vm2, %v194_v13, 0.0 }
  0x21   : > { %v227_v17 = vadd.f32 %v226_v12, %v225_v14  ;;  %400 = vmatprep.subr.mxu0 %v208_v8  ;;  %470 = vmatprep.subr.mxu1 %v209_v9  ;;  %v244_v37 = vsel %vm222_vm2, %v211_v18, 0.0  ;;  %v246_v39 = vsel %vm222_vm2, %v195_v20, 0.0  ;;  %v248_v41 = vsel %vm222_vm2, %v212_v25, 0.0 }
  0x22   : > { %325 = vmatmul.mubr.f32.vlgmr.msra.gmra.mrb[0].mxu0 %v189_v1  ;;  %395 = vmatmul.mubr.f32.vlgmr.msra.gmra.mrb[0].mxu1 %v190_v2  ;;  %v250_v43 = vsel %vm222_vm2, %v196_v22, 0.0  ;;  %v252_v45 = vsel %vm222_vm2, %v213_v27, 0.0 }
  0x23   : > { %v229_v21 = vadd.f32 %v228_v15, %v227_v17  ;;  %401 = vmatpush1.xpose.msra.mxu0 %v191_v3  ;;  %464 = vmatprep.mubr.f32.mxu0 %v208_v8  ;;  %v259_v8 = vld [vmem:[#allocation3] sm:$0xf] }
  0x24   : > { %471 = vmatpush1.xpose.msra.mxu1 %v192_v7  ;;  %540 = vmatprep.subr.mxu0 %v210_v16 }
  0x25   : > { %v231_v24 = vadd.f32 %v230_v19, %v229_v21  ;;  %534 = vmatprep.mubr.f32.mxu1 %v209_v9  ;;  %610 = vmatprep.subr.mxu1 %v211_v18 }
  0x26   : > { %465 = vmatmul.mubr.f32.vlgmr.msra.gmra.mrb[2].mxu0 %v191_v3 }
  0x27   : > { %v233_v28 = vadd.f32 %v232_v23, %v231_v24  ;;  %541 = vmatpush1.xpose.msra.mxu0 %v193_v10  ;;  %535 = vmatmul.mubr.f32.vlgmr.msra.gmra.mrb[2].mxu1 %v192_v7 }
  0x28   : > { %604 = vmatprep.mubr.f32.mxu0 %v210_v16  ;;  %611 = vmatpush1.xpose.msra.mxu1 %v194_v13 }
  0x29   : > { %v235_v30 = vadd.f32 %v234_v26, %v233_v28  ;;  %680 = vmatprep.subr.mxu0 %v212_v25  ;;  %674 = vmatprep.mubr.f32.mxu1 %v211_v18 }
  0x2a   : > { %605 = vmatmul.mubr.f32.vlgmr.msra.gmra.mrb[4].mxu0 %v193_v10  ;;  %750 = vmatprep.subr.mxu1 %v213_v27 }
  0x2b   : > { %v237_v32 = vadd.f32 %v236_v29, %v235_v30  ;;  %681 = vmatpush1.xpose.msra.mxu0 %v195_v20  ;;  %675 = vmatmul.mubr.f32.vlgmr.msra.gmra.mrb[4].mxu1 %v194_v13 }
  0x2c   : > { %744 = vmatprep.mubr.f32.mxu0 %v212_v25  ;;  %751 = vmatpush1.xpose.msra.mxu1 %v196_v22 }
  0x2d   : > { %v239_v34 = vadd.f32 %v238_v31, %v237_v32  ;;  %814 = vmatprep.mubr.f32.mxu1 %v213_v27 }
  0x2e   : > { %745 = vmatmul.mubr.f32.vlgmr.msra.gmra.mrb[6].mxu0 %v195_v20 }
  0x2f   : > { %v241_v36 = vadd.f32 %v240_v33, %v239_v34  ;;  %815 = vmatmul.mubr.f32.vlgmr.msra.gmra.mrb[6].mxu1 %v196_v22 }
  0x31   : > { %v243_v38 = vadd.f32 %v242_v35, %v241_v36 }
  0x33   : > { %v245_v40 = vadd.f32 %v244_v37, %v243_v38 }
  0x35   : > { %v247_v42 = vadd.f32 %v246_v39, %v245_v40 }
  0x37   : > { %v249_v44 = vadd.f32 %v248_v41, %v247_v42 }
  0x39   : > { %v251_v46 = vadd.f32 %v250_v43, %v249_v44 }
  0x3b   : > { %v253_v47 = vadd.f32 %v252_v45, %v251_v46 }
  0x3d   : > { %254 = vadd.xlane.f32.xlu0 %v253_v47 }
  0xca   : > { %v255_v49 = vpop.xlane.xlu0 %254 }
  0xcb   : > { %v256_v50 = vadd.f32 %v255_v49, %v197_v48 }
  0xcd   : > { %258 = vst.msk [vmem:[#allocation2] sm:$0xf] %vm257_vm3, %v256_v50 }
  0xd4   : > { %v827_v12 = vld [vmem:[#allocation2] sm:$0xf] (!%p943_p8) }
  0xd5   : > { %828 = vst.msk [vmem:[%s1087_s22] sm:$0xf] (!%p943_p8), %vm257_vm3, %v827_v12 }
  0xf5   : > { %v326_v51 = vpop.f32.mrb[0].mxu0  ;;  %v396_v52 = vpop.f32.mrb[0].mxu1 }
  0xf6   : > { %v328_v53 = vpop.f32.mrb[1].mxu0  ;;  %v397_v54 = vadd.f32 %v396_v52, %v326_v51  ;;  %v398_v55 = vpop.f32.mrb[1].mxu1 }
  0xf9   : > { %v466_v56 = vpop.f32.mrb[2].mxu0 }
  0xfa   : > { %v467_v57 = vadd.f32 %v466_v56, %v397_v54  ;;  %v468_v58 = vpop.f32.mrb[3].mxu0  ;;  %v536_v59 = vpop.f32.mrb[2].mxu1 }
  0xfb   : > { %v538_v60 = vpop.f32.mrb[3].mxu1 }
  0xfc   : > { %v537_v61 = vadd.f32 %v536_v59, %v467_v57 }
  0xfd   : > { %v606_v62 = vpop.f32.mrb[4].mxu0 }
  0xfe   : > { %v607_v63 = vadd.f32 %v606_v62, %v537_v61  ;;  %v608_v0 = vpop.f32.mrb[5].mxu0  ;;  %v676_v1 = vpop.f32.mrb[4].mxu1 }
  0xff   : > { %v678_v2 = vpop.f32.mrb[5].mxu1 }
 0x100   : > { %v677_v3 = vadd.f32 %v676_v1, %v607_v63 }
 0x101   : > { %v746_v4 = vpop.f32.mrb[6].mxu0 }
 0x102   : > { %v747_v5 = vadd.f32 %v746_v4, %v677_v3  ;;  %v748_v6 = vpop.f32.mrb[7].mxu0  ;;  %v816_v7 = vpop.f32.mrb[6].mxu1  ;;  %826 = sbr.rel (%p943_p8) target bundleno = 273 (0x111), region = 32 }
 0x103   : > { %v818_v9 = vpop.f32.mrb[7].mxu1 }
 0x104   : > { %v817_v10 = vadd.f32 %v816_v7, %v747_v5 }
 0x106   : > { %v820_v11 = vadd.f32 %v817_v10, %v259_v8 }
 0x108   : > { %822 = vst.msk [vmem:[#allocation3] sm:$0xf] %vm821_vm4, %v820_v11 }
 0x10f   : > { %v829_v13 = vld [vmem:[#allocation3] sm:$0xf] }
 0x110   : > { %830 = vst.msk [vmem:[%s1092_s26] sm:$0xf] %vm821_vm4, %v829_v13 }
 0x111 PF: > { %s13_s13 = sadd.s32 1, %s1033_s13   ;;  %s1147_s9 = smov %s1025_s11 }
 0x112   : > { %p10_p9 = scmp.ge.s32.totalorder %s13_s13, 6   ;;  %s1148_s10 = smov %s1029_s12 }
 0x113   : > { %s1149_s11 = smov %s1152_s14  ;;  %s1150_s12 = smov %s1156_s15 }
 0x114   :  { %12 = sbr.rel (!%p10_p9) target bundleno = 3 (0x3), region = 74 }

// kernel: conv_1x1x1_forward.3
= control target key start
LH: loop header
LB: loop body
LE: loop exit
PB: predicated region body
PF: predicated region fallthrough
CT: control target
= control target key end

     0   :  { %s1219_s12 = smov 0   ;;  %s1221_s13 = smov 0   ;;  %s1685_s0 = inlined_call_operand.vmem [shape: f32[2,4,4096], index: 0, kind: input, shape index: {}]   ;;  %s1686_s1 = inlined_call_operand.vmem [shape: f32[8,4], index: 1, kind: input, shape index: {}]   ;;  %s1687_s2 = inlined_call_operand.vmem [shape: f32[8,1], index: 2, kind: input, shape index: {}]   ;;  %s1688_s3 = inlined_call_operand.vmem [shape: f32[2,8,4096], index: 3, kind: output, shape index: {}]  }
   0x1   :  { %s1223_s14 = smov 0   ;;  %s1225_s15 = smov 0  }
   0x2   :  { %s1227_s16 = smov 0  }
   0x3 LB: > { %s22_s17 = sadd.s32 1, %s1185_s14  ;;  %s25_s18 = sadd.s32 1, %s1189_s15  ;;  %s1193_s16 = sphi %s1227_s16, %s13_s16   ;;  %s1189_s15 = sphi %s1225_s15, %s1736_s15   ;;  %s1185_s14 = sphi %s1223_s14, %s1735_s14   ;;  %s1181_s13 = sphi %s1221_s13, %s1734_s13   ;;  %s1177_s12 = sphi %s1219_s12, %s1733_s12  }
   0x4   : > { %p23_p0 = scmp.ge.s32.totalorder %s22_s17, 2  ;;  %p1096_p1 = scmp.ge.s32.totalorder %s1193_s16, 1 }
   0x5   : > { %p158_p2 = scmp.lt.s32.totalorder %s1193_s16, 5 }
   0x6   : > { %s1738_s17 = smov (%p23_p0, %s22_s17), 0  ;;  %s1740_s18 = smov (!%p23_p0, %s25_s18), %s1189_s15 }
   0x7   : > { %p159_p3 = pnand %p1096_p1, %p158_p2  ;;  %p27_p4 = scmp.ge.s32.totalorder %s1740_s18, 2 }
   0x9   : > { %s1742_s18 = smov (%p27_p4, %s1740_s18), 0  ;;  %162 = sbr.rel (%p159_p3) target bundleno = 188 (0xbc), region = 32 }
  0x10   : > { %v218_v0 = vld [vmem:[%s1686_s1] sm:$0xff]  ;;  %v1195_v1 = vmov 0   ;;  %v1196_v2 = vmov 2   ;;  %v1197_v3 = vmov 1   ;;  %v1198_v4 = vmov 3   ;;  %s1097_s23 = sshll.u32 %s1177_s12, 4 }
  0x11   : > { %1149 = vset.pattern.permute.xlu0 %v1195_v1  ;;  %1151 = vset.pattern.permute.xlu1 %v1196_v2  ;;  %v948_v5 = vld [vmem:[%s1687_s2] sm:$0xff]  ;;  %p191_p5 = scmp.lt.s32.totalorder %s1181_s13, 1  ;;  %p193_p6 = scmp.lt.s32.totalorder %s1097_s23, 31  ;;  %v232_v6 = vlaneseq }
  0x12   : > { %221 = vperm.xlu0 %1149, %v218_v0   ;;  %589 = vperm.xlu1 %1151, %v218_v0  }
  0x13   : > { %s1744_s13 = smov (!%p191_p5, %s1181_s13), 1  ;;  %s1746_s23 = smov (!%p193_p6, %s1097_s23), 31  ;;  %v233_v7 = vshrl.u32 %v232_v6, 7 }
  0x14   : > { %s1098_s24 = sshll.u32 %s1744_s13, 5 }
  0x15   : > { %s1262_s25 = sadd.s32 %s1098_s24, %s1746_s23  ;;  %v234_v8 = vsub.s32 0, %v233_v7  ;;  %v238_v9 = vsub.s32 4, %v233_v7  ;;  %v1272_v12 = vsub.s32 1, %v233_v7  ;;  %v1274_v13 = vsub.s32 5, %v233_v7 }
  0x16   : > { %1150 = vset.pattern.permute.xlu0 %v1197_v3  ;;  %1152 = vset.pattern.permute.xlu1 %v1198_v4  ;;  %s1099_s26 = sshll.u32 %s1262_s25, 2  ;;  %v1280_v16 = vsub.s32 2, %v233_v7  ;;  %v1282_v17 = vsub.s32 3, %v233_v7  ;;  %v1288_v20 = vsub.s32 6, %v233_v7  ;;  %v1290_v21 = vsub.s32 7, %v233_v7  ;;  %s1102_s30 = sshll.u32 %s1262_s25, 3 }
  0x17   : > { %409 = vperm.xlu0 %1150, %v218_v0   ;;  %769 = vperm.xlu1 %1152, %v218_v0   ;;  %s198_s29 = scalar_lea.vmem %s1685_s0, %s1099_s26  ;;  %s1652_s6 = scalar_lea.vmem %s1688_s3, %s1102_s30 }
  0x18   : > { %v1268_v10 = vld [vmem:[%s198_s29] sm:$0xff]  ;;  %v1270_v11 = vld [vmem:[%s198_s29 + $0x8] sm:$0xff]  ;;  %v1276_v14 = vld [vmem:[%s198_s29 + $0x10] sm:$0xff] }
  0x19   : > { %v1278_v15 = vld [vmem:[%s198_s29 + $0x18] sm:$0xff]  ;;  %v1284_v18 = vld [vmem:[%s198_s29 + $0x20] sm:$0xff]  ;;  %v1286_v19 = vld [vmem:[%s198_s29 + $0x28] sm:$0xff]  ;;  %v235_v24 = vrot.slane %v1268_v10, %v234_v8  ;;  %v239_v25 = vrot.slane %v1268_v10, %v238_v9  ;;  %v243_v26 = vrot.slane %v1270_v11, %v234_v8  ;;  %v247_v27 = vrot.slane %v1270_v11, %v238_v9 }
  0x1a   : > { %v1292_v22 = vld [vmem:[%s198_s29 + $0x30] sm:$0xff]  ;;  %v1294_v23 = vld [vmem:[%s198_s29 + $0x38] sm:$0xff]  ;;  %v251_v28 = vrot.slane %v1276_v14, %v234_v8  ;;  %v255_v29 = vrot.slane %v1276_v14, %v238_v9  ;;  %v259_v30 = vrot.slane %v1278_v15, %v234_v8  ;;  %v263_v31 = vrot.slane %v1278_v15, %v238_v9 }
  0x1b   : > { %1153 = vset.pattern.permute.xlu1 %v1195_v1  ;;  %1154 = vset.pattern.permute.xlu0 %v1195_v1  ;;  %v267_v32 = vrot.slane %v1284_v18, %v234_v8  ;;  %v271_v33 = vrot.slane %v1284_v18, %v238_v9  ;;  %v275_v34 = vrot.slane %v1286_v19, %v234_v8 }
  0x1c   : > { %951 = vperm.xlu1 %1153, %v948_v5   ;;  %v279_v35 = vrot.slane %v1286_v19, %v238_v9  ;;  %v283_v36 = vrot.slane %v1292_v22, %v234_v8  ;;  %v287_v37 = vrot.slane %v1292_v22, %v238_v9  ;;  %v291_v38 = vrot.slane %v1294_v23, %v234_v8 }
  0x1d   : > { %v295_v39 = vrot.slane %v1294_v23, %v238_v9  ;;  %v1312_v40 = vrot.slane %v235_v24, %v234_v8  ;;  %v1314_v41 = vrot.slane %v239_v25, %v234_v8  ;;  %v1316_v42 = vrot.slane %v243_v26, %v234_v8 }
  0x1e   : > { %v1318_v43 = vrot.slane %v247_v27, %v234_v8  ;;  %v1320_v44 = vrot.slane %v251_v28, %v234_v8  ;;  %v1322_v45 = vrot.slane %v255_v29, %v234_v8  ;;  %v1324_v46 = vrot.slane %v259_v30, %v234_v8 }
  0x1f   : > { %v1326_v47 = vrot.slane %v263_v31, %v234_v8  ;;  %v1328_v48 = vrot.slane %v267_v32, %v234_v8  ;;  %v1330_v49 = vrot.slane %v271_v33, %v234_v8  ;;  %v1332_v50 = vrot.slane %v275_v34, %v234_v8 }
  0x20   : > { %v1334_v51 = vrot.slane %v279_v35, %v234_v8  ;;  %v1336_v52 = vrot.slane %v283_v36, %v234_v8  ;;  %v1338_v53 = vrot.slane %v287_v37, %v234_v8  ;;  %v1340_v54 = vrot.slane %v291_v38, %v234_v8 }
  0x21   : > { %v1342_v55 = vrot.slane %v295_v39, %v234_v8  ;;  %v415_v56 = vrot.slane %v1268_v10, %v1272_v12  ;;  %v419_v57 = vrot.slane %v1268_v10, %v1274_v13  ;;  %v423_v58 = vrot.slane %v1270_v11, %v1272_v12 }
  0x22   : > { %v427_v59 = vrot.slane %v1270_v11, %v1274_v13  ;;  %v431_v60 = vrot.slane %v1276_v14, %v1272_v12  ;;  %v435_v61 = vrot.slane %v1276_v14, %v1274_v13  ;;  %v439_v62 = vrot.slane %v1278_v15, %v1272_v12 }
  0x23   : > { %v443_v63 = vrot.slane %v1278_v15, %v1274_v13  ;;  %v447_v0 = vrot.slane %v1284_v18, %v1272_v12  ;;  %v451_v1 = vrot.slane %v1284_v18, %v1274_v13  ;;  %v455_v2 = vrot.slane %v1286_v19, %v1272_v12 }
  0x24   : > { %v459_v3 = vrot.slane %v1286_v19, %v1274_v13  ;;  %v463_v4 = vrot.slane %v1292_v22, %v1272_v12  ;;  %v467_v5 = vrot.slane %v1292_v22, %v1274_v13  ;;  %v471_v6 = vrot.slane %v1294_v23, %v1272_v12 }
  0x25   : > { %v475_v7 = vrot.slane %v1294_v23, %v1274_v13  ;;  %v1377_v8 = vrot.slane %v415_v56, %v1272_v12  ;;  %v1380_v9 = vrot.slane %v419_v57, %v1272_v12  ;;  %v1383_v24 = vrot.slane %v423_v58, %v1272_v12 }
  0x26   : > { %v1386_v25 = vrot.slane %v427_v59, %v1272_v12  ;;  %v1389_v26 = vrot.slane %v431_v60, %v1272_v12  ;;  %v1392_v27 = vrot.slane %v435_v61, %v1272_v12  ;;  %v1395_v13 = vrot.slane %v439_v62, %v1272_v12 }
  0x27   : > { %v1398_v28 = vrot.slane %v443_v63, %v1272_v12  ;;  %v1401_v29 = vrot.slane %v447_v0, %v1272_v12  ;;  %v1404_v30 = vrot.slane %v451_v1, %v1272_v12  ;;  %v1407_v31 = vrot.slane %v455_v2, %v1272_v12 }
  0x28   : > { %v1410_v32 = vrot.slane %v459_v3, %v1272_v12  ;;  %v1413_v33 = vrot.slane %v463_v4, %v1272_v12  ;;  %v1416_v34 = vrot.slane %v467_v5, %v1272_v12  ;;  %v1419_v35 = vrot.slane %v471_v6, %v1272_v12 }
  0x29   : > { %v1422_v36 = vrot.slane %v475_v7, %v1272_v12  ;;  %v595_v37 = vrot.slane %v1268_v10, %v1280_v16  ;;  %v599_v38 = vrot.slane %v1268_v10, %v1288_v20  ;;  %v603_v39 = vrot.slane %v1270_v11, %v1280_v16 }
  0x2a   : > { %1689 = vst [vmem:[#allocation2_spill] sm:$0xff] %v1419_v35  ;;  %v607_v56 = vrot.slane %v1270_v11, %v1288_v20  ;;  %v611_v57 = vrot.slane %v1276_v14, %v1280_v16  ;;  %v615_v58 = vrot.slane %v1276_v14, %v1288_v20  ;;  %v619_v12 = vrot.slane %v1278_v15, %v1280_v16 }
  0x2b   : > { %1690 = vst [vmem:[#allocation3_spill] sm:$0xff] %v1422_v36  ;;  %v623_v59 = vrot.slane %v1278_v15, %v1288_v20  ;;  %v627_v60 = vrot.slane %v1284_v18, %v1280_v16  ;;  %v631_v61 = vrot.slane %v1284_v18, %v1288_v20  ;;  %v635_v62 = vrot.slane %v1286_v19, %v1280_v16 }
  0x2c   : > { %v639_v63 = vrot.slane %v1286_v19, %v1288_v20  ;;  %v643_v0 = vrot.slane %v1292_v22, %v1280_v16  ;;  %v647_v1 = vrot.slane %v1292_v22, %v1288_v20  ;;  %v651_v2 = vrot.slane %v1294_v23, %v1280_v16 }
  0x2d   : > { %v655_v3 = vrot.slane %v1294_v23, %v1288_v20  ;;  %v1457_v4 = vrot.slane %v595_v37, %v1280_v16  ;;  %v1460_v5 = vrot.slane %v599_v38, %v1280_v16  ;;  %v1463_v6 = vrot.slane %v603_v39, %v1280_v16 }
  0x2e   : > { %v1466_v7 = vrot.slane %v607_v56, %v1280_v16  ;;  %v1469_v36 = vrot.slane %v611_v57, %v1280_v16  ;;  %v1472_v35 = vrot.slane %v615_v58, %v1280_v16  ;;  %v1475_v20 = vrot.slane %v619_v12, %v1280_v16 }
  0x2f   : > { %v1478_v37 = vrot.slane %v623_v59, %v1280_v16  ;;  %v1481_v38 = vrot.slane %v627_v60, %v1280_v16  ;;  %v1484_v39 = vrot.slane %v631_v61, %v1280_v16  ;;  %v1487_v56 = vrot.slane %v635_v62, %v1280_v16 }
  0x30   : > { %v1490_v57 = vrot.slane %v639_v63, %v1280_v16  ;;  %v1493_v58 = vrot.slane %v643_v0, %v1280_v16  ;;  %v1496_v12 = vrot.slane %v647_v1, %v1280_v16  ;;  %v1499_v59 = vrot.slane %v651_v2, %v1280_v16 }
  0x31   : > { %1691 = vst [vmem:[#allocation4_spill] sm:$0xff] %v1484_v39  ;;  %1692 = vst [vmem:[#allocation5_spill] sm:$0xff] %v1487_v56  ;;  %v1502_v60 = vrot.slane %v655_v3, %v1280_v16  ;;  %v775_v61 = vrot.slane %v1268_v10, %v1282_v17  ;;  %v779_v62 = vrot.slane %v1268_v10, %v1290_v21 }
  0x32   : > { %1693 = vst [vmem:[#allocation6_spill] sm:$0xff] %v1490_v57  ;;  %1694 = vst [vmem:[#allocation7_spill] sm:$0xff] %v1493_v58  ;;  %v783_v63 = vrot.slane %v1270_v11, %v1282_v17  ;;  %v787_v0 = vrot.slane %v1270_v11, %v1290_v21  ;;  %v791_v1 = vrot.slane %v1276_v14, %v1282_v17 }
  0x33   : > { %1695 = vst [vmem:[#allocation8_spill] sm:$0xff] %v1496_v12  ;;  %1696 = vst [vmem:[#allocation9_spill] sm:$0xff] %v1499_v59  ;;  %v795_v2 = vrot.slane %v1276_v14, %v1290_v21  ;;  %v799_v16 = vrot.slane %v1278_v15, %v1282_v17  ;;  %v803_v3 = vrot.slane %v1278_v15, %v1290_v21 }
  0x34   : > { %1697 = vst [vmem:[#allocation10_spill] sm:$0xff] %v1502_v60  ;;  %v807_v10 = vrot.slane %v1284_v18, %v1282_v17  ;;  %v811_v60 = vrot.slane %v1284_v18, %v1290_v21  ;;  %v815_v11 = vrot.slane %v1286_v19, %v1282_v17  ;;  %v819_v59 = vrot.slane %v1286_v19, %v1290_v21 }
  0x35   : > { %v823_v14 = vrot.slane %v1292_v22, %v1282_v17  ;;  %v827_v12 = vrot.slane %v1292_v22, %v1290_v21  ;;  %v831_v15 = vrot.slane %v1294_v23, %v1282_v17  ;;  %v835_v58 = vrot.slane %v1294_v23, %v1290_v21 }
  0x36   : > { %v1537_v18 = vrot.slane %v775_v61, %v1282_v17  ;;  %v1540_v57 = vrot.slane %v779_v62, %v1282_v17  ;;  %v1543_v19 = vrot.slane %v783_v63, %v1282_v17  ;;  %v1546_v56 = vrot.slane %v787_v0, %v1282_v17 }
  0x37   : > { %v1549_v22 = vrot.slane %v791_v1, %v1282_v17  ;;  %v1552_v39 = vrot.slane %v795_v2, %v1282_v17  ;;  %v1555_v21 = vrot.slane %v799_v16, %v1282_v17  ;;  %v1558_v23 = vrot.slane %v803_v3, %v1282_v17 }
  0x38   : > { %1698 = vst [vmem:[#allocation11_spill] sm:$0xff] %v1546_v56  ;;  %v1561_v61 = vrot.slane %v807_v10, %v1282_v17  ;;  %v1564_v62 = vrot.slane %v811_v60, %v1282_v17  ;;  %v1567_v63 = vrot.slane %v815_v11, %v1282_v17  ;;  %v1570_v0 = vrot.slane %v819_v59, %v1282_v17 }
  0x39   : > { %1699 = vst [vmem:[#allocation12_spill] sm:$0xff] %v1549_v22  ;;  %1700 = vst [vmem:[#allocation13_spill] sm:$0xff] %v1552_v39  ;;  %v1573_v2 = vrot.slane %v823_v14, %v1282_v17  ;;  %v1576_v16 = vrot.slane %v827_v12, %v1282_v17  ;;  %v1579_v3 = vrot.slane %v831_v15, %v1282_v17 }
  0x3a   : > { %1701 = vst [vmem:[#allocation14_spill] sm:$0xff] %v1555_v21  ;;  %1702 = vst [vmem:[#allocation15_spill] sm:$0xff] %v1558_v23  ;;  %v1582_v10 = vrot.slane %v835_v58, %v1282_v17 }
  0x3b   : > { %1703 = vst [vmem:[#allocation16_spill] sm:$0xff] %v1561_v61  ;;  %1704 = vst [vmem:[#allocation17_spill] sm:$0xff] %v1564_v62 }
  0x3c   : > { %1705 = vst [vmem:[#allocation18_spill] sm:$0xff] %v1567_v63  ;;  %1706 = vst [vmem:[#allocation19_spill] sm:$0xff] %v1570_v0 }
  0x3d   : > { %1707 = vst [vmem:[#allocation20_spill] sm:$0xff] %v1573_v2  ;;  %1708 = vst [vmem:[#allocation21_spill] sm:$0xff] %v1576_v16 }
  0x3e   : > { %1709 = vst [vmem:[#allocation22_spill] sm:$0xff] %v1579_v3  ;;  %1710 = vst [vmem:[#allocation23_spill] sm:$0xff] %v1582_v10  ;;  %v1712_v3 = vld [vmem:[#allocation3_spill] sm:$0xff] }
  0x91   : > { %v222_v1 = vpop.permute.xlu0 %221  ;;  %v590_v63 = vpop.permute.xlu1 %589 }
  0x92   : > { %v376_v60 = vmul.f32 %v1312_v40, %v222_v1  ;;  %v377_v11 = vmul.f32 %v1314_v41, %v222_v1  ;;  %v378_v59 = vmul.f32 %v1316_v42, %v222_v1  ;;  %v379_v0 = vmul.f32 %v1318_v43, %v222_v1 }
  0x93   : > { %v380_v14 = vmul.f32 %v1320_v44, %v222_v1  ;;  %v381_v12 = vmul.f32 %v1322_v45, %v222_v1  ;;  %v382_v16 = vmul.f32 %v1324_v46, %v222_v1  ;;  %v383_v15 = vmul.f32 %v1326_v47, %v222_v1 }
  0x94   : > { %v384_v17 = vmul.f32 %v1328_v48, %v222_v1  ;;  %v385_v58 = vmul.f32 %v1330_v49, %v222_v1  ;;  %v386_v40 = vmul.f32 %v1332_v50, %v222_v1  ;;  %v387_v41 = vmul.f32 %v1334_v51, %v222_v1 }
  0x95   : > { %v388_v42 = vmul.f32 %v1336_v52, %v222_v1  ;;  %v389_v43 = vmul.f32 %v1338_v53, %v222_v1  ;;  %v390_v44 = vmul.f32 %v1340_v54, %v222_v1  ;;  %v391_v45 = vmul.f32 %v1342_v55, %v222_v1  ;;  %v1711_v1 = vld [vmem:[#allocation2_spill] sm:$0xff] }
  0x96   : > { %v410_v10 = vpop.permute.xlu0 %409  ;;  %v736_v46 = vmul.f32 %v1457_v4, %v590_v63  ;;  %v737_v47 = vmul.f32 %v1460_v5, %v590_v63  ;;  %v738_v48 = vmul.f32 %v1463_v6, %v590_v63  ;;  %v739_v49 = vmul.f32 %v1466_v7, %v590_v63 }
  0x97   : > { %v556_v50 = vmul.f32 %v1377_v8, %v410_v10  ;;  %v557_v51 = vmul.f32 %v1380_v9, %v410_v10  ;;  %v558_v52 = vmul.f32 %v1383_v24, %v410_v10  ;;  %v559_v53 = vmul.f32 %v1386_v25, %v410_v10 }
  0x98   : > { %v560_v54 = vmul.f32 %v1389_v26, %v410_v10  ;;  %v561_v55 = vmul.f32 %v1392_v27, %v410_v10  ;;  %v562_v4 = vmul.f32 %v1395_v13, %v410_v10  ;;  %v563_v5 = vmul.f32 %v1398_v28, %v410_v10 }
  0x99   : > { %v564_v6 = vmul.f32 %v1401_v29, %v410_v10  ;;  %v565_v7 = vmul.f32 %v1404_v30, %v410_v10  ;;  %v566_v8 = vmul.f32 %v1407_v31, %v410_v10  ;;  %v567_v9 = vmul.f32 %v1410_v32, %v410_v10 }
  0x9a   : > { %v568_v24 = vmul.f32 %v1413_v33, %v410_v10  ;;  %v569_v25 = vmul.f32 %v1416_v34, %v410_v10  ;;  %v570_v26 = vmul.f32 %v1711_v1, %v410_v10  ;;  %v571_v27 = vmul.f32 %v1712_v3, %v410_v10 }
  0x9b   : > { %v572_v2 = vadd.f32 %v556_v50, %v376_v60  ;;  %v573_v13 = vadd.f32 %v557_v51, %v377_v11  ;;  %v574_v62 = vadd.f32 %v558_v52, %v378_v59  ;;  %v575_v28 = vadd.f32 %v559_v53, %v379_v0  ;;  %v1714_v59 = vld [vmem:[#allocation5_spill] sm:$0xff]  ;;  %v770_v50 = vpop.permute.xlu1 %769 }
  0x9c   : > { %v576_v61 = vadd.f32 %v560_v54, %v380_v14  ;;  %v577_v29 = vadd.f32 %v561_v55, %v381_v12  ;;  %v578_v23 = vadd.f32 %v562_v4, %v382_v16  ;;  %v579_v30 = vadd.f32 %v563_v5, %v383_v15  ;;  %v1713_v16 = vld [vmem:[#allocation4_spill] sm:$0xff]  ;;  %v1715_v12 = vld [vmem:[#allocation6_spill] sm:$0xff] }
  0x9d   : > { %v580_v21 = vadd.f32 %v564_v6, %v384_v17  ;;  %v581_v31 = vadd.f32 %v565_v7, %v385_v58  ;;  %v582_v39 = vadd.f32 %v566_v8, %v386_v40  ;;  %v583_v32 = vadd.f32 %v567_v9, %v387_v41  ;;  %v1716_v17 = vld [vmem:[#allocation7_spill] sm:$0xff]  ;;  %v1717_v40 = vld [vmem:[#allocation8_spill] sm:$0xff] }
  0x9e   : > { %v584_v22 = vadd.f32 %v568_v24, %v388_v42  ;;  %v585_v33 = vadd.f32 %v569_v25, %v389_v43  ;;  %v586_v56 = vadd.f32 %v570_v26, %v390_v44  ;;  %v587_v34 = vadd.f32 %v571_v27, %v391_v45  ;;  %v1718_v42 = vld [vmem:[#allocation9_spill] sm:$0xff]  ;;  %v1719_v43 = vld [vmem:[#allocation10_spill] sm:$0xff] }
  0x9f   : > { %v740_v1 = vmul.f32 %v1469_v36, %v590_v63  ;;  %v741_v3 = vmul.f32 %v1472_v35, %v590_v63  ;;  %v742_v10 = vmul.f32 %v1475_v20, %v590_v63  ;;  %v743_v0 = vmul.f32 %v1478_v37, %v590_v63 }
  0xa0   : > { %v744_v60 = vmul.f32 %v1481_v38, %v590_v63  ;;  %v745_v11 = vmul.f32 %v1713_v16, %v590_v63  ;;  %v746_v14 = vmul.f32 %v1714_v59, %v590_v63  ;;  %v747_v15 = vmul.f32 %v1715_v12, %v590_v63  ;;  %v952_v16 = vpop.permute.xlu1 %951 }
  0xa1   : > { %v748_v58 = vmul.f32 %v1716_v17, %v590_v63  ;;  %v749_v41 = vmul.f32 %v1717_v40, %v590_v63  ;;  %v750_v36 = vmul.f32 %v1718_v42, %v590_v63  ;;  %v751_v35 = vmul.f32 %v1719_v43, %v590_v63 }
  0xa2   : > { %v752_v44 = vadd.f32 %v736_v46, %v572_v2  ;;  %v753_v20 = vadd.f32 %v737_v47, %v573_v13  ;;  %v754_v45 = vadd.f32 %v738_v48, %v574_v62  ;;  %v755_v37 = vadd.f32 %v739_v49, %v575_v28  ;;  %v1720_v2 = vld [vmem:[#allocation11_spill] sm:$0xff]  ;;  %v1727_v13 = vld [vmem:[#allocation18_spill] sm:$0xff] }
  0xa3   : > { %v756_v38 = vadd.f32 %v740_v1, %v576_v61  ;;  %v757_v51 = vadd.f32 %v741_v3, %v577_v29  ;;  %v758_v52 = vadd.f32 %v742_v10, %v578_v23  ;;  %v759_v53 = vadd.f32 %v743_v0, %v579_v30  ;;  %v1721_v61 = vld [vmem:[#allocation12_spill] sm:$0xff]  ;;  %v1722_v23 = vld [vmem:[#allocation13_spill] sm:$0xff]  ;;  %v1728_v28 = vld [vmem:[#allocation19_spill] sm:$0xff] }
  0xa4   : > { %v760_v54 = vadd.f32 %v744_v60, %v580_v21  ;;  %v761_v55 = vadd.f32 %v745_v11, %v581_v31  ;;  %v762_v4 = vadd.f32 %v746_v14, %v582_v39  ;;  %v763_v5 = vadd.f32 %v747_v15, %v583_v32  ;;  %v1723_v21 = vld [vmem:[#allocation14_spill] sm:$0xff]  ;;  %v1724_v39 = vld [vmem:[#allocation15_spill] sm:$0xff]  ;;  %v1729_v29 = vld [vmem:[#allocation20_spill] sm:$0xff] }
  0xa5   : > { %v764_v6 = vadd.f32 %v748_v58, %v584_v22  ;;  %v765_v7 = vadd.f32 %v749_v41, %v585_v33  ;;  %v766_v8 = vadd.f32 %v750_v36, %v586_v56  ;;  %v767_v9 = vadd.f32 %v751_v35, %v587_v34  ;;  %v1725_v22 = vld [vmem:[#allocation16_spill] sm:$0xff]  ;;  %v1726_v56 = vld [vmem:[#allocation17_spill] sm:$0xff]  ;;  %v1731_v32 = vld [vmem:[#allocation22_spill] sm:$0xff] }
  0xa6   : > { %v916_v24 = vmul.f32 %v1537_v18, %v770_v50  ;;  %v917_v63 = vmul.f32 %v1540_v57, %v770_v50  ;;  %v918_v62 = vmul.f32 %v1543_v19, %v770_v50  ;;  %v919_v46 = vmul.f32 %v1720_v2, %v770_v50  ;;  %v1730_v30 = vld [vmem:[#allocation21_spill] sm:$0xff]  ;;  %v1732_v34 = vld [vmem:[#allocation23_spill] sm:$0xff] }
  0xa7   : > { %v920_v47 = vmul.f32 %v1721_v61, %v770_v50  ;;  %v921_v48 = vmul.f32 %v1722_v23, %v770_v50  ;;  %v922_v49 = vmul.f32 %v1723_v21, %v770_v50  ;;  %v923_v25 = vmul.f32 %v1724_v39, %v770_v50 }
  0xa8   : > { %v924_v26 = vmul.f32 %v1725_v22, %v770_v50  ;;  %v925_v27 = vmul.f32 %v1726_v56, %v770_v50  ;;  %v926_v18 = vmul.f32 %v1727_v13, %v770_v50  ;;  %v927_v57 = vmul.f32 %v1728_v28, %v770_v50 }
  0xa9   : > { %v928_v19 = vmul.f32 %v1729_v29, %v770_v50  ;;  %v929_v31 = vmul.f32 %v1730_v30, %v770_v50  ;;  %v930_v33 = vmul.f32 %v1731_v32, %v770_v50  ;;  %v931_v1 = vmul.f32 %v1732_v34, %v770_v50 }
  0xaa   : > { %v932_v3 = vadd.f32 %v916_v24, %v752_v44  ;;  %v933_v10 = vadd.f32 %v917_v63, %v753_v20  ;;  %v934_v0 = vadd.f32 %v918_v62, %v754_v45  ;;  %v935_v60 = vadd.f32 %v919_v46, %v755_v37 }
  0xab   : > { %v936_v11 = vadd.f32 %v920_v47, %v756_v38  ;;  %v937_v59 = vadd.f32 %v921_v48, %v757_v51  ;;  %v938_v14 = vadd.f32 %v922_v49, %v758_v52  ;;  %v939_v12 = vadd.f32 %v923_v25, %v759_v53 }
  0xac   : > { %v940_v15 = vadd.f32 %v924_v26, %v760_v54  ;;  %v941_v17 = vadd.f32 %v925_v27, %v761_v55  ;;  %v942_v58 = vadd.f32 %v926_v18, %v762_v4  ;;  %v943_v40 = vadd.f32 %v927_v57, %v763_v5 }
  0xad   : > { %v944_v41 = vadd.f32 %v928_v19, %v764_v6  ;;  %v945_v42 = vadd.f32 %v929_v31, %v765_v7  ;;  %v946_v36 = vadd.f32 %v930_v33, %v766_v8  ;;  %v947_v43 = vadd.f32 %v931_v1, %v767_v9 }
  0xae   : > { %v954_v35 = vadd.f32 %v952_v16, %v932_v3  ;;  %v955_v44 = vadd.f32 %v952_v16, %v933_v10  ;;  %v956_v20 = vadd.f32 %v952_v16, %v934_v0  ;;  %v957_v50 = vadd.f32 %v952_v16, %v935_v60 }
  0xaf   : > { %v958_v45 = vadd.f32 %v952_v16, %v936_v11  ;;  %v959_v37 = vadd.f32 %v952_v16, %v937_v59  ;;  %v960_v24 = vadd.f32 %v952_v16, %v938_v14  ;;  %v961_v38 = vadd.f32 %v952_v16, %v939_v12 }
  0xb0   : > { %v962_v51 = vadd.f32 %v952_v16, %v940_v15  ;;  %v963_v52 = vadd.f32 %v952_v16, %v941_v17  ;;  %v964_v53 = vadd.f32 %v952_v16, %v942_v58  ;;  %v965_v54 = vadd.f32 %v952_v16, %v943_v40 }
  0xb1   : > { %v966_v55 = vadd.f32 %v952_v16, %v944_v41  ;;  %v967_v4 = vadd.f32 %v952_v16, %v945_v42  ;;  %v968_v5 = vadd.f32 %v952_v16, %v946_v36  ;;  %v969_v6 = vadd.f32 %v952_v16, %v947_v43 }
  0xb2   : > { %v970_v7 = vmax.f32 %v954_v35, 0.0  ;;  %v971_v8 = vmax.f32 %v955_v44, 0.0  ;;  %v972_v9 = vmax.f32 %v956_v20, 0.0  ;;  %v973_v63 = vmax.f32 %v957_v50, 0.0 }
  0xb3   : > { %v974_v62 = vmax.f32 %v958_v45, 0.0  ;;  %v975_v2 = vmax.f32 %v959_v37, 0.0  ;;  %v976_v46 = vmax.f32 %v960_v24, 0.0  ;;  %v977_v61 = vmax.f32 %v961_v38, 0.0 }
  0xb4   : > { %v978_v47 = vmax.f32 %v962_v51, 0.0  ;;  %v979_v23 = vmax.f32 %v963_v52, 0.0  ;;  %v980_v48 = vmax.f32 %v964_v53, 0.0  ;;  %v981_v21 = vmax.f32 %v965_v54, 0.0  ;;  %986 = vst [vmem:[%s1652_s6] sm:$0xff] %v970_v7  ;;  %987 = vst [vmem:[%s1652_s6 + $0x8] sm:$0xff] %v971_v8 }
  0xb5   : > { %988 = vst [vmem:[%s1652_s6 + $0x10] sm:$0xff] %v972_v9  ;;  %989 = vst [vmem:[%s1652_s6 + $0x18] sm:$0xff] %v973_v63  ;;  %v982_v49 = vmax.f32 %v966_v55, 0.0  ;;  %v983_v39 = vmax.f32 %v967_v4, 0.0  ;;  %v984_v25 = vmax.f32 %v968_v5, 0.0  ;;  %v985_v22 = vmax.f32 %v969_v6, 0.0 }
  0xb6   : > { %990 = vst [vmem:[%s1652_s6 + $0x20] sm:$0xff] %v974_v62  ;;  %991 = vst [vmem:[%s1652_s6 + $0x28] sm:$0xff] %v975_v2 }
  0xb7   : > { %992 = vst [vmem:[%s1652_s6 + $0x30] sm:$0xff] %v976_v46  ;;  %993 = vst [vmem:[%s1652_s6 + $0x38] sm:$0xff] %v977_v61 }
  0xb8   : > { %994 = vst [vmem:[%s1652_s6 + $0x40] sm:$0xff] %v978_v47  ;;  %995 = vst [vmem:[%s1652_s6 + $0x48] sm:$0xff] %v979_v23 }
  0xb9   : > { %996 = vst [vmem:[%s1652_s6 + $0x50] sm:$0xff] %v980_v48  ;;  %997 = vst [vmem:[%s1652_s6 + $0x58] sm:$0xff] %v981_v21 }
  0xba   : > { %998 = vst [vmem:[%s1652_s6 + $0x60] sm:$0xff] %v982_v49  ;;  %999 = vst [vmem:[%s1652_s6 + $0x68] sm:$0xff] %v983_v39 }
  0xbb   : > { %1000 = vst [vmem:[%s1652_s6 + $0x70] sm:$0xff] %v984_v25  ;;  %1001 = vst [vmem:[%s1652_s6 + $0x78] sm:$0xff] %v985_v22 }
  0xbc PF: > { %s13_s16 = sadd.s32 1, %s1193_s16   ;;  %s1733_s12 = smov %s1185_s14 }
  0xbd   : > { %p10_p7 = scmp.ge.s32.totalorder %s13_s16, 6   ;;  %s1734_s13 = smov %s1189_s15 }
  0xbe   : > { %s1735_s14 = smov %s1738_s17  ;;  %s1736_s15 = smov %s1742_s18 }
  0xbf   :  { %12 = sbr.rel (!%p10_p7) target bundleno = 3 (0x3), region = 62 }

</bundles_post_ra>
